<compile_context>
chip_gen: v5e
topology: v5e:2x2
jax: 0.10.0
libtpu: 0.0.40
codegen_flags: <defaults>
</compile_context>

<pallas_src>
import functools

import jax
import jax.numpy as jnp
from jax.experimental import pallas as pl
from jax.experimental.pallas import tpu as pltpu

HEAD_PAD = 8  # fused mean|value head width: action_dim(4) + value(1) -> next mult of 8


def _round_up(x, m):
    return ((x + m - 1) // m) * m


def policy_net_kernel(x_ref, w1_ref, b1_ref, w2_ref, b2_ref, wh_ref, bh_ref,
                      head_ref):
    """One batch tile: feature MLP + fused (mean|value) head -> (TB, 8) slab."""
    x = x_ref[...]                                                   # (TB, S)
    hp = jax.lax.Precision.HIGHEST  # fp32-faithful matmuls (mem-bound kernel)

    # feature_net: Linear -> ReLU -> Linear -> ReLU  (MXU matmuls, VPU relu)
    h1 = jnp.dot(x, w1_ref[...], preferred_element_type=jnp.float32,
                 precision=hp) + b1_ref[...]
    h1 = jnp.maximum(h1, 0.0)
    h2 = jnp.dot(h1, w2_ref[...], preferred_element_type=jnp.float32,
                 precision=hp) + b2_ref[...]
    h2 = jnp.maximum(h2, 0.0)

    # fused heads: columns [0:A] = policy mean, column [A] = value, rest zero.
    head_ref[...] = (jnp.dot(h2, wh_ref[...], preferred_element_type=jnp.float32,
                             precision=hp)
                     + bh_ref[...])                                  # (TB, 8)


@functools.partial(jax.jit, static_argnames=("block_b",))
def policy_network_forward(state, params, *, block_b=8192):
    """state: (B, state_dim) f32.  params: dict from init_params (pre-packed head)."""
    B, S = state.shape
    H = params["w1"].shape[1]
    A = params["wm"].shape[1]
    wh, bh = params["wh"], params["bh"]          # pre-packed (H, 8) / (1, 8)

    # Batch tile: multiple of 8 (or == B for tiny batches).  For B >= 16, cap
    # at ~B/2 so the "parallel" grid axis has >= 2 blocks and v7x can shard
    # the batch across its 2 TensorCores.
    if B >= 16:
        tb = min(block_b, _round_up(pl.cdiv(B, 2), 8))
        tb = max(8, (tb // 8) * 8)
    else:
        tb = B
    grid = (pl.cdiv(B, tb),)

    def batch_spec(width):                # tiled over the batch grid axis
        return pl.BlockSpec((tb, width), lambda i: (i, 0))

    def resident_spec(shape):             # weights/biases: loaded once, resident
        return pl.BlockSpec(shape, lambda i: (0, 0))

    flops = 2 * B * (S * H + H * H + H * HEAD_PAD)
    bytes_accessed = 4 * (B * S + S * H + H + H * H + H
                          + H * HEAD_PAD + HEAD_PAD + B * HEAD_PAD)

    head = pl.pallas_call(
        policy_net_kernel,
        out_shape=jax.ShapeDtypeStruct((B, HEAD_PAD), jnp.float32),
        grid=grid,
        in_specs=[
            batch_spec(S),                       # state tile
            resident_spec((S, H)), resident_spec((1, H)),                # W1, b1
            resident_spec((H, H)), resident_spec((1, H)),                # W2, b2
            resident_spec((H, HEAD_PAD)), resident_spec((1, HEAD_PAD)),  # fused head
        ],
        out_specs=batch_spec(HEAD_PAD),          # (TB, 8) fused mean|value slab
        compiler_params=pltpu.CompilerParams(
            dimension_semantics=("parallel",),   # v7x: shard batch over 2 TCs
            vmem_limit_bytes=32 * 1024 * 1024,   # safe on v5e/v6e/v7x for tb<=8192
        ),
        cost_estimate=pl.CostEstimate(
            flops=flops, transcendentals=0, bytes_accessed=bytes_accessed),
    )(state, params["w1"], params["b1"], params["w2"], params["b2"], wh, bh)

    mean = head[:, :A]                                     # (B, A)
    value = head[:, A:A + 1]                               # (B, 1)
    # std is batch-independent: computed outside the kernel, broadcast here.
    std = jnp.broadcast_to(jnp.exp(params["log_std"]), mean.shape)
    return mean, std, value


def init_params(key, state_dim, action_dim, hidden_dim=64):
    """Deterministic PyTorch-style (uniform +/- 1/sqrt(fan_in)) synthetic init.

    Also pre-packs the fused (mean|value) head weights into a (H, HEAD_PAD)
    slab once, so the forward pass does no per-call packing work.
    """
    def linear(k, fan_in, fan_out):
        kw, kb = jax.random.split(k)
        bound = 1.0 / jnp.sqrt(fan_in)
        w = jax.random.uniform(kw, (fan_in, fan_out), jnp.float32, -bound, bound)
        b = jax.random.uniform(kb, (1, fan_out), jnp.float32, -bound, bound)
        return w, b

    k1, k2, k3, k4 = jax.random.split(key, 4)
    w1, b1 = linear(k1, state_dim, hidden_dim)
    w2, b2 = linear(k2, hidden_dim, hidden_dim)
    wm, bm = linear(k3, hidden_dim, action_dim)
    wv, bv = linear(k4, hidden_dim, 1)
    log_std = jnp.zeros((1, action_dim), jnp.float32)  # nn.Parameter(torch.zeros(A))

    assert action_dim + 1 <= HEAD_PAD
    wh = (jnp.zeros((hidden_dim, HEAD_PAD), jnp.float32)
          .at[:, :action_dim].set(wm)
          .at[:, action_dim:action_dim + 1].set(wv))
    bh = (jnp.zeros((1, HEAD_PAD), jnp.float32)
          .at[:, :action_dim].set(bm)
          .at[:, action_dim:action_dim + 1].set(bv))

    return dict(w1=w1, b1=b1, w2=w2, b2=b2, wm=wm, bm=bm, wv=wv, bv=bv,
                wh=wh, bh=bh, log_std=log_std)


def reference_forward(state, p):
    h1 = jnp.maximum(state @ p["w1"] + p["b1"], 0.0)
    h2 = jnp.maximum(h1 @ p["w2"] + p["b2"], 0.0)
    mean = h2 @ p["wm"] + p["bm"]
    std = jnp.broadcast_to(jnp.exp(p["log_std"]), mean.shape)
    value = h2 @ p["wv"] + p["bv"]
    return mean, std, value


def _check(state, params, block_b):
    mean, std, value = policy_network_forward(state, params, block_b=block_b)
    jax.block_until_ready((mean, std, value))
    mean_r, std_r, value_r = reference_forward(state, params)
    assert mean.shape == mean_r.shape and std.shape == std_r.shape
    assert value.shape == value_r.shape
    assert jnp.allclose(mean, mean_r, atol=1e-4), "mean mismatch"
    assert jnp.allclose(std, std_r, atol=1e-5), "std mismatch"
    assert jnp.allclose(value, value_r, atol=1e-4), "value mismatch"


if __name__ == "__main__":
    state_dim, action_dim, hidden_dim = 8, 4, 64

    key = jax.random.PRNGKey(0)
    k_params, k_small, k_big = jax.random.split(key, 3)
    params = init_params(k_params, state_dim, action_dim, hidden_dim)

    # Small batch: single grid step (block == full batch of 2 rows).
    state_small = jax.random.normal(k_small, (2, state_dim), jnp.float32)
    _check(state_small, params, block_b=8192)

    # Larger batch: exercises the batch grid (>= 2 blocks -> v7x 2-TC path)
    # and a non-divisible last block (1000 = 504 + 496-row partial tile).
    state_big = jax.random.normal(k_big, (1000, state_dim), jnp.float32)
    _check(state_big, params, block_b=8192)

    print("KERNEL_OK")
</pallas_src>

<mosaic_0001>
module attributes {stable_mosaic.version = 11 : i64} {
  func.func @policy_net_kernel(%arg0: i32, %arg1: memref<2x8xf32, #tpu.memory_space<vmem>>, %arg2: memref<8x64xf32, #tpu.memory_space<vmem>>, %arg3: memref<1x64xf32, #tpu.memory_space<vmem>>, %arg4: memref<64x64xf32, #tpu.memory_space<vmem>>, %arg5: memref<1x64xf32, #tpu.memory_space<vmem>>, %arg6: memref<64x8xf32, #tpu.memory_space<vmem>>, %arg7: memref<1x8xf32, #tpu.memory_space<vmem>>, %arg8: memref<2x8xf32, #tpu.memory_space<vmem>>) attributes {dimension_semantics = [#tpu.dimension_semantics<parallel>], iteration_bounds = array<i64: 1>, scalar_prefetch = 0 : i64, scratch_operands = 0 : i64, tpu.core_type = #tpu.core_type<tc>, window_params = [{transform_indices = @transform_0, window_bounds = array<i64: 2, 8>}, {pipeline_mode = #tpu.pipeline_mode<synchronous>, transform_indices = @transform_1, window_bounds = array<i64: 8, 64>}, {pipeline_mode = #tpu.pipeline_mode<synchronous>, transform_indices = @transform_2, window_bounds = array<i64: 1, 64>}, {pipeline_mode = #tpu.pipeline_mode<synchronous>, transform_indices = @transform_3, window_bounds = array<i64: 64, 64>}, {pipeline_mode = #tpu.pipeline_mode<synchronous>, transform_indices = @transform_4, window_bounds = array<i64: 1, 64>}, {pipeline_mode = #tpu.pipeline_mode<synchronous>, transform_indices = @transform_5, window_bounds = array<i64: 64, 8>}, {pipeline_mode = #tpu.pipeline_mode<synchronous>, transform_indices = @transform_6, window_bounds = array<i64: 1, 8>}, {transform_indices = @transform_7, window_bounds = array<i64: 2, 8>}]} {
    %c0 = arith.constant 0 : index
    %c0_0 = arith.constant 0 : index
    %0 = vector.load %arg1[%c0, %c0_0] : memref<2x8xf32, #tpu.memory_space<vmem>>, vector<2x8xf32>
    %c0_1 = arith.constant 0 : index
    %c0_2 = arith.constant 0 : index
    %1 = vector.load %arg2[%c0_1, %c0_2] : memref<8x64xf32, #tpu.memory_space<vmem>>, vector<8x64xf32>
    %cst = arith.constant dense<0.000000e+00> : vector<2x64xf32>
    %2 = tpu.matmul %0, %1, %cst {dimension_numbers = #tpu.dot_dimension_numbers<[1], [0], [0], [1], [0, 0, 1, 1], [], []>, precision = #tpu.contract_precision<fp32>} : vector<2x8xf32>, vector<8x64xf32>, vector<2x64xf32> -> vector<2x64xf32>
    %c0_3 = arith.constant 0 : index
    %c0_4 = arith.constant 0 : index
    %3 = vector.load %arg3[%c0_3, %c0_4] : memref<1x64xf32, #tpu.memory_space<vmem>>, vector<1x64xf32>
    %4 = vector.broadcast %3 : vector<1x64xf32> to vector<2x64xf32>
    %5 = arith.addf %2, %4 : vector<2x64xf32>
    %cst_5 = arith.constant 0.000000e+00 : f32
    %6 = vector.broadcast %cst_5 : f32 to vector<2x64xf32>
    %7 = arith.maximumf %5, %6 : vector<2x64xf32>
    %c0_6 = arith.constant 0 : index
    %c0_7 = arith.constant 0 : index
    %8 = vector.load %arg4[%c0_6, %c0_7] : memref<64x64xf32, #tpu.memory_space<vmem>>, vector<64x64xf32>
    %cst_8 = arith.constant dense<0.000000e+00> : vector<2x64xf32>
    %9 = tpu.matmul %7, %8, %cst_8 {dimension_numbers = #tpu.dot_dimension_numbers<[1], [0], [0], [1], [0, 0, 1, 1], [], []>, precision = #tpu.contract_precision<fp32>} : vector<2x64xf32>, vector<64x64xf32>, vector<2x64xf32> -> vector<2x64xf32>
    %c0_9 = arith.constant 0 : index
    %c0_10 = arith.constant 0 : index
    %10 = vector.load %arg5[%c0_9, %c0_10] : memref<1x64xf32, #tpu.memory_space<vmem>>, vector<1x64xf32>
    %11 = vector.broadcast %10 : vector<1x64xf32> to vector<2x64xf32>
    %12 = arith.addf %9, %11 : vector<2x64xf32>
    %cst_11 = arith.constant 0.000000e+00 : f32
    %13 = vector.broadcast %cst_11 : f32 to vector<2x64xf32>
    %14 = arith.maximumf %12, %13 : vector<2x64xf32>
    %c0_12 = arith.constant 0 : index
    %c0_13 = arith.constant 0 : index
    %15 = vector.load %arg6[%c0_12, %c0_13] : memref<64x8xf32, #tpu.memory_space<vmem>>, vector<64x8xf32>
    %cst_14 = arith.constant dense<0.000000e+00> : vector<2x8xf32>
    %16 = tpu.matmul %14, %15, %cst_14 {dimension_numbers = #tpu.dot_dimension_numbers<[1], [0], [0], [1], [0, 0, 1, 1], [], []>, precision = #tpu.contract_precision<fp32>} : vector<2x64xf32>, vector<64x8xf32>, vector<2x8xf32> -> vector<2x8xf32>
    %c0_15 = arith.constant 0 : index
    %c0_16 = arith.constant 0 : index
    %17 = vector.load %arg7[%c0_15, %c0_16] : memref<1x8xf32, #tpu.memory_space<vmem>>, vector<1x8xf32>
    %18 = vector.broadcast %17 : vector<1x8xf32> to vector<2x8xf32>
    %19 = arith.addf %16, %18 : vector<2x8xf32>
    %c0_17 = arith.constant 0 : index
    %c0_18 = arith.constant 0 : index
    %20 = vector.load %arg8[%c0_17, %c0_18] : memref<2x8xf32, #tpu.memory_space<vmem>>, vector<2x8xf32>
    tpu.vector_store %arg8[%c0_17, %c0_18], %19 {strides = array<i32>} : memref<2x8xf32, #tpu.memory_space<vmem>>, vector<2x8xf32>,
    return
  }
  func.func @transform_0(%arg0: i32) -> (i32, i32) {
    %c0_i32 = arith.constant 0 : i32
    %c0_i32_0 = arith.constant 0 : i32
    return %arg0, %c0_i32 : i32, i32
  }
  func.func @transform_1(%arg0: i32) -> (i32, i32) {
    %c0_i32 = arith.constant 0 : i32
    %c0_i32_0 = arith.constant 0 : i32
    %c0_i32_1 = arith.constant 0 : i32
    return %c0_i32, %c0_i32_0 : i32, i32
  }
  func.func @transform_2(%arg0: i32) -> (i32, i32) {
    %c0_i32 = arith.constant 0 : i32
    %c0_i32_0 = arith.constant 0 : i32
    %c0_i32_1 = arith.constant 0 : i32
    return %c0_i32, %c0_i32_0 : i32, i32
  }
  func.func @transform_3(%arg0: i32) -> (i32, i32) {
    %c0_i32 = arith.constant 0 : i32
    %c0_i32_0 = arith.constant 0 : i32
    %c0_i32_1 = arith.constant 0 : i32
    return %c0_i32, %c0_i32_0 : i32, i32
  }
  func.func @transform_4(%arg0: i32) -> (i32, i32) {
    %c0_i32 = arith.constant 0 : i32
    %c0_i32_0 = arith.constant 0 : i32
    %c0_i32_1 = arith.constant 0 : i32
    return %c0_i32, %c0_i32_0 : i32, i32
  }
  func.func @transform_5(%arg0: i32) -> (i32, i32) {
    %c0_i32 = arith.constant 0 : i32
    %c0_i32_0 = arith.constant 0 : i32
    %c0_i32_1 = arith.constant 0 : i32
    return %c0_i32, %c0_i32_0 : i32, i32
  }
  func.func @transform_6(%arg0: i32) -> (i32, i32) {
    %c0_i32 = arith.constant 0 : i32
    %c0_i32_0 = arith.constant 0 : i32
    %c0_i32_1 = arith.constant 0 : i32
    return %c0_i32, %c0_i32_0 : i32, i32
  }
  func.func @transform_7(%arg0: i32) -> (i32, i32) {
    %c0_i32 = arith.constant 0 : i32
    %c0_i32_0 = arith.constant 0 : i32
    return %arg0, %c0_i32 : i32, i32
  }
}

</mosaic_0001>

<bundles_post_ra>
// kernel: policy_network_forward.1
= control target key start
LH: loop header
LB: loop body
LE: loop exit
PB: predicated region body
PF: predicated region fallthrough
CT: control target
= control target key end

     0   :  { %12 = vsyncpa [#allocation3], 0  ;;  %s740_s27 = smov [#allocation2]   ;;  %s930_s0 = inlined_call_operand.hbm [shape: f32[2,8], index: 0, kind: input, shape index: {}]   ;;  %s931_s1 = inlined_call_operand.vmem [shape: f32[8,64], index: 1, kind: input, shape index: {}]   ;;  %s932_s2 = inlined_call_operand.vmem [shape: f32[1,64], index: 2, kind: input, shape index: {}]   ;;  %s933_s3 = inlined_call_operand.vmem [shape: f32[64,64], index: 3, kind: input, shape index: {}]   ;;  %s934_s4 = inlined_call_operand.vmem [shape: f32[1,64], index: 4, kind: input, shape index: {}]   ;;  %s935_s5 = inlined_call_operand.vmem [shape: f32[64,8], index: 5, kind: input, shape index: {}]   ;;  %s936_s6 = inlined_call_operand.vmem [shape: f32[1,8], index: 6, kind: input, shape index: {}]   ;;  %s937_s7 = inlined_call_operand.vmem [shape: f32[2,8], index: 7, kind: output, shape index: {}]  }
   0x1   :  { %s18_s26 = sshll.u32 %s930_s0, 4  ;;  %s20_s28 = sshll.u32 %s740_s27, 4  ;;  %s19_s26 = int_to_ptr.hbm [resolvable:$true] %s18_s26  ;;  %s21_s28 = int_to_ptr.vmem [resolvable:$true] %s20_s28 }
   0x2   :  { %23 = dma.hbm_to_vmem [thread:$0]  %s19_s26, 32, %s21_s28, [#allocation3]  }
   0x3   :  { %738 = dma.done.wait [#allocation3], 32  }
   0x4   :  { %739 = vsyncadd [#allocation3], 4294967264  ;;  %vm46_vm0 = vcmask 64512   ;;  %v41_v0 = vld [vmem:[%s931_s1] sm:$0xff]  ;;  %v204_v2 = vld [vmem:[%s933_s3 + $0x38] sm:$0xff]  ;;  %vm209_vm1 = vcmask 523264  }
   0x5   :  { %v40_v1 = vld [vmem:[#allocation2] sm:$0x3]  ;;  %v65_v3 = vand.u32 4294901760, %v41_v0  ;;  %v790_v5 = vand.u32 4294901760, %v204_v2  ;;  %v203_v6 = vld [vmem:[%s933_s3 + $0x30] sm:$0xff]  ;;  %v202_v25 = vld [vmem:[%s933_s3 + $0x28] sm:$0xff] }
   0x6   :  { %v48_v4 = vsel %vm46_vm0, %v40_v1, 0  ;;  %v795_v8 = vand.u32 4294901760, %v203_v6  ;;  %v820_v26 = vand.u32 4294901760, %v202_v25  ;;  %v201_v27 = vld [vmem:[%s933_s3 + $0x20] sm:$0xff]  ;;  %v200_v30 = vld [vmem:[%s933_s3 + $0x18] sm:$0xff]  ;;  %v199_v34 = vld [vmem:[%s933_s3 + $0x10] sm:$0xff] }
   0x7   :  { %v67_v7 = vand.u32 4294901760, %v48_v4  ;;  %v92_v9 = vsub.f32 %v41_v0, %v65_v3  ;;  %66 = vmatpush.msra.mxu0 %v65_v3  ;;  %142 = vmatpush.msra.mxu3 %v65_v3  ;;  %v798_v10 = vsub.f32 %v204_v2, %v790_v5  ;;  %v826_v29 = vand.u32 4294901760, %v201_v27  ;;  %v198_v39 = vld [vmem:[%s933_s3 + $0x8] sm:$0xff]  ;;  %v197_v45 = vld [vmem:[%s933_s3] sm:$0xff] }
   0x8   :  { %v801_v12 = vsub.f32 %v203_v6, %v795_v8  ;;  %v267_v28 = vsub.f32 %v202_v25, %v820_v26  ;;  %v229_v33 = vand.u32 4294901760, %v200_v30  ;;  %v231_v38 = vand.u32 4294901760, %v199_v34  ;;  %v711_v61 = vld [vmem:[%s932_s2] ss:$0 sm:$0xff] }
   0x9   :  { %v68_v11 = vsub.f32 %v48_v4, %v67_v7  ;;  %119 = vmatpush.msra.mxu2 %v92_v9  ;;  %v93_v13 = vand.u32 4294901760, %v92_v9  ;;  %v256_v14 = vand.u32 4294901760, %v798_v10  ;;  %v273_v32 = vsub.f32 %v201_v27, %v826_v29 }
   0xa   :  { %v262_v16 = vand.u32 4294901760, %v801_v12  ;;  %v268_v31 = vand.u32 4294901760, %v267_v28  ;;  %v279_v37 = vsub.f32 %v200_v30, %v229_v33  ;;  %v285_v43 = vsub.f32 %v199_v34, %v231_v38 }
   0xb   :  { %122 = vmatmul.f32.vlgmr.msra.gmra.mxu2 %v68_v11  ;;  %v69_v15 = vand.u32 4294901760, %v68_v11  ;;  %168 = vmatpush.msrb.mxu0 %v93_v13  ;;  %v94_v17 = vsub.f32 %v92_v9, %v93_v13  ;;  %v257_v18 = vsub.f32 %v798_v10, %v256_v14  ;;  %v274_v36 = vand.u32 4294901760, %v273_v32 }
   0xc   :  { %222 = vmatpush.msrb.mxu2 %v790_v5  ;;  %v263_v20 = vsub.f32 %v801_v12, %v262_v16  ;;  %v269_v35 = vsub.f32 %v267_v28, %v268_v31  ;;  %v280_v42 = vand.u32 4294901760, %v279_v37  ;;  %v233_v44 = vand.u32 4294901760, %v198_v39 }
   0xd   :  { %v70_v19 = vsub.f32 %v68_v11, %v69_v15  ;;  %146 = vmatmul.f32.vlgmr.msra.gmra.mxu3 %v69_v15  ;;  %v95_v21 = vand.u32 4294901760, %v94_v17  ;;  %v258_v22 = vand.u32 4294901760, %v257_v18  ;;  %v275_v41 = vsub.f32 %v273_v32, %v274_v36  ;;  %v458_v17 = vld [vmem:[%s935_s5 + $0x38] sm:$0xff] }
   0xe   :  { %224 = vmatpush.msrb.mxu2 %v795_v8  ;;  %v264_v24 = vand.u32 4294901760, %v263_v20  ;;  %v270_v40 = vand.u32 4294901760, %v269_v35  ;;  %v281_v47 = vsub.f32 %v279_v37, %v280_v42  ;;  %v286_v48 = vand.u32 4294901760, %v285_v43 }
   0xf   :  { %v71_v23 = vand.u32 4294901760, %v70_v19  ;;  %96 = vmatpush.msra.mxu1 %v95_v21  ;;  %259 = vmatpush.msrb.mxu3 %v258_v22  ;;  %v276_v46 = vand.u32 4294901760, %v275_v41  ;;  %v235_v49 = vand.u32 4294901760, %v197_v45  ;;  %v291_v50 = vsub.f32 %v198_v39, %v233_v44  ;;  %v457_v19 = vld [vmem:[%s935_s5 + $0x30] sm:$0xff]  ;;  %v456_v22 = vld [vmem:[%s935_s5 + $0x28] sm:$0xff] }
  0x10   :  { %98 = vmatmul.f32.vlgmr.msra.gmra.mxu1 %v67_v7  ;;  %226 = vmatpush.msrb.mxu2 %v820_v26  ;;  %v282_v51 = vand.u32 4294901760, %v281_v47  ;;  %v287_v52 = vsub.f32 %v285_v43, %v286_v48  ;;  %v860_v18 = vand.u32 4294901760, %v458_v17  ;;  %v868_v21 = vand.u32 4294901760, %v457_v19 }
  0x11   :  { %72 = vmatmul.f32.vlgmr.msra.gmra.mxu0 %v71_v23  ;;  %190 = vmatpush.msrb.mxu1 %v65_v3  ;;  %v297_v53 = vsub.f32 %v197_v45, %v235_v49  ;;  %v292_v54 = vand.u32 4294901760, %v291_v50  ;;  %v879_v25 = vand.u32 4294901760, %v456_v22  ;;  %vm703_vm2 = vcmask 58368  }
  0x12   :  { %265 = vmatpush.msrb.mxu3 %v264_v24  ;;  %317 = vmatpush.msra.mxu0 %v798_v10  ;;  %v288_v55 = vand.u32 4294901760, %v287_v52  ;;  %v866_v20 = vsub.f32 %v458_v17, %v860_v18  ;;  %v877_v24 = vsub.f32 %v457_v19, %v868_v21 }
  0x13   :  { %354 = vmatpush.msra.mxu1 %v790_v5  ;;  %228 = vmatpush.msrb.mxu2 %v826_v29  ;;  %v298_v56 = vand.u32 4294901760, %v297_v53  ;;  %v293_v57 = vsub.f32 %v291_v50, %v292_v54 }
  0x14   :  { %320 = vmatpush.msra.mxu0 %v801_v12  ;;  %271 = vmatpush.msrb.mxu3 %v270_v40  ;;  %v509_v23 = vand.u32 4294901760, %v866_v20 }
  0x15   :  { %356 = vmatpush.msra.mxu1 %v795_v8  ;;  %230 = vmatpush.msrb.mxu2 %v229_v33  ;;  %v299_v58 = vsub.f32 %v297_v53, %v298_v56  ;;  %v294_v59 = vand.u32 4294901760, %v293_v57 }
  0x16   :  { %323 = vmatpush.msra.mxu0 %v267_v28  ;;  %277 = vmatpush.msrb.mxu3 %v276_v46  ;;  %v510_v27 = vsub.f32 %v866_v20, %v509_v23  ;;  %v515_v28 = vand.u32 4294901760, %v877_v24 }
  0x17   :  { %358 = vmatpush.msra.mxu1 %v820_v26  ;;  %232 = vmatpush.msrb.mxu2 %v231_v38  ;;  %v300_v60 = vand.u32 4294901760, %v299_v58 }
  0x18   :  { %192 = vmatmul.f32.vlgmr.msrb.gmra.mxu1 %v67_v7  ;;  %326 = vmatpush.msra.mxu0 %v273_v32  ;;  %v511_v32 = vand.u32 4294901760, %v510_v27 }
  0x19   :  { %170 = vmatmul.f32.vlgmr.msrb.gmra.mxu0 %v67_v7  ;;  %360 = vmatpush.msra.mxu1 %v826_v29 }
  0x1a   :  { %329 = vmatpush.msra.mxu0 %v279_v37  ;;  %234 = vmatpush.msrb.mxu2 %v233_v44  ;;  %v453_v37 = vld [vmem:[%s935_s5 + $0x10] sm:$0xff] }
  0x1b   :  { %362 = vmatpush.msra.mxu1 %v229_v33  ;;  %283 = vmatpush.msrb.mxu3 %v282_v51  ;;  %v484_v41 = vand.u32 4294901760, %v453_v37 }
  0x1c   :  { %332 = vmatpush.msra.mxu0 %v285_v43  ;;  %236 = vmatpush.msrb.mxu2 %v235_v49  ;;  %v452_v43 = vld [vmem:[%s935_s5 + $0x8] sm:$0xff] }
  0x1d   :  { %364 = vmatpush.msra.mxu1 %v231_v38  ;;  %289 = vmatpush.msrb.mxu3 %v288_v55  ;;  %v538_v46 = vsub.f32 %v453_v37, %v484_v41  ;;  %v486_v47 = vand.u32 4294901760, %v452_v43 }
  0x1e   :  { %335 = vmatpush.msra.mxu0 %v291_v50  ;;  %387 = vmatpush.msra.mxu2 %v256_v14 }
  0x1f   :  { %366 = vmatpush.msra.mxu1 %v233_v44  ;;  %295 = vmatpush.msrb.mxu3 %v294_v59  ;;  %v539_v51 = vand.u32 4294901760, %v538_v46  ;;  %v544_v52 = vsub.f32 %v452_v43, %v486_v47 }
  0x20   :  { %338 = vmatpush.msra.mxu0 %v297_v53  ;;  %391 = vmatpush.msra.mxu2 %v262_v16 }
  0x21   :  { %368 = vmatpush.msra.mxu1 %v235_v49  ;;  %301 = vmatpush.msrb.mxu3 %v300_v60  ;;  %v540_v55 = vsub.f32 %v538_v46, %v539_v51 }
  0x22   :  { %395 = vmatpush.msra.mxu2 %v268_v31  ;;  %475 = vmatpush.msrb.mxu0 %v860_v18  ;;  %v454_v31 = vld [vmem:[%s935_s5 + $0x18] sm:$0xff] }
  0x23   :  { %430 = vmatpush.msra.mxu3 %v790_v5  ;;  %512 = vmatpush.msrb.mxu1 %v511_v32  ;;  %v541_v59 = vand.u32 4294901760, %v540_v55 }
  0x24   :  { %399 = vmatpush.msra.mxu2 %v274_v36  ;;  %477 = vmatpush.msrb.mxu0 %v868_v21  ;;  %v482_v36 = vand.u32 4294901760, %v454_v31 }
  0x25   :  { %432 = vmatpush.msra.mxu3 %v795_v8 }
  0x26   :  { %403 = vmatpush.msra.mxu2 %v280_v42  ;;  %479 = vmatpush.msrb.mxu0 %v879_v25  ;;  %v532_v42 = vsub.f32 %v454_v31, %v482_v36 }
  0x27   :  { %434 = vmatpush.msra.mxu3 %v820_v26  ;;  %v455_v26 = vld [vmem:[%s935_s5 + $0x20] sm:$0xff] }
  0x28   :  { %407 = vmatpush.msra.mxu2 %v286_v48  ;;  %v892_v30 = vand.u32 4294901760, %v455_v26  ;;  %v533_v48 = vand.u32 4294901760, %v532_v42 }
  0x29   :  { %436 = vmatpush.msra.mxu3 %v826_v29  ;;  %v890_v29 = vsub.f32 %v456_v22, %v879_v25 }
  0x2a   :  { %411 = vmatpush.msra.mxu2 %v292_v54  ;;  %v526_v35 = vsub.f32 %v455_v26, %v892_v30  ;;  %481 = vmatpush.msrb.mxu0 %v892_v30  ;;  %v534_v54 = vsub.f32 %v532_v42, %v533_v48 }
  0x2b   :  { %438 = vmatpush.msra.mxu3 %v229_v33  ;;  %v516_v33 = vsub.f32 %v877_v24, %v515_v28  ;;  %v521_v34 = vand.u32 4294901760, %v890_v29 }
  0x2c   :  { %415 = vmatpush.msra.mxu2 %v298_v56  ;;  %v527_v40 = vand.u32 4294901760, %v526_v35  ;;  %483 = vmatpush.msrb.mxu0 %v482_v36  ;;  %v545_v56 = vand.u32 4294901760, %v544_v52  ;;  %v535_v58 = vand.u32 4294901760, %v534_v54 }
  0x2d   :  { %440 = vmatpush.msra.mxu3 %v231_v38  ;;  %v517_v38 = vand.u32 4294901760, %v516_v33  ;;  %v522_v39 = vsub.f32 %v890_v29, %v521_v34 }
  0x2e   :  { %v528_v45 = vsub.f32 %v526_v35, %v527_v40  ;;  %485 = vmatpush.msrb.mxu0 %v484_v41  ;;  %v546_v60 = vsub.f32 %v544_v52, %v545_v56 }
  0x2f   :  { %442 = vmatpush.msra.mxu3 %v233_v44  ;;  %518 = vmatpush.msrb.mxu1 %v517_v38  ;;  %v523_v44 = vand.u32 4294901760, %v522_v39 }
  0x30   :  { %v529_v50 = vand.u32 4294901760, %v528_v45  ;;  %487 = vmatpush.msrb.mxu0 %v486_v47 }
  0x31   :  { %444 = vmatpush.msra.mxu3 %v235_v49  ;;  %v451_v49 = vld [vmem:[%s935_s5] sm:$0xff]  ;;  %524 = vmatpush.msrb.mxu1 %v523_v44 }
  0x32   :  { %v488_v53 = vand.u32 4294901760, %v451_v49 }
  0x33   :  { %530 = vmatpush.msrb.mxu1 %v529_v50 }
  0x34   :  { %v550_v57 = vsub.f32 %v451_v49, %v488_v53  ;;  %489 = vmatpush.msrb.mxu0 %v488_v53 }
  0x35   :  { %536 = vmatpush.msrb.mxu1 %v535_v58 }
  0x37   :  { %542 = vmatpush.msrb.mxu1 %v541_v59 }
  0x8d   :  { %v99_v63 = vpop.f32.mrf.mxu1 }
  0x8e   :  { %v73_v62 = vpop.f32.mrf.mxu0  ;;  %v123_v1 = vpop.f32.mrf.mxu2 }
  0x8f   :  { %v74_v0 = vadd.f32 %v711_v61, %v73_v62  ;;  %v551_v61 = vand.u32 4294901760, %v550_v57  ;;  %v547_v62 = vand.u32 4294901760, %v546_v60 }
  0x90   :  { %v147_v3 = vpop.f32.mrf.mxu3 }
  0x91   :  { %v100_v2 = vadd.f32 %v99_v63, %v74_v0  ;;  %v552_v63 = vsub.f32 %v550_v57, %v551_v61  ;;  %548 = vmatpush.msrb.mxu1 %v547_v62 }
  0x93   :  { %v124_v4 = vadd.f32 %v123_v1, %v100_v2  ;;  %v553_v0 = vand.u32 4294901760, %v552_v63  ;;  %v712_v1 = vld [vmem:[%s934_s4] ss:$0 sm:$0xff] }
  0x95   :  { %v148_v5 = vadd.f32 %v147_v3, %v124_v4  ;;  %v193_v7 = vpop.f32.mrf.mxu1  ;;  %554 = vmatpush.msrb.mxu1 %v553_v0 }
  0x96   :  { %v171_v6 = vpop.f32.mrf.mxu0 }
  0x97   :  { %v172_v8 = vadd.f32 %v171_v6, %v148_v5 }
  0x99   :  { %v194_v9 = vadd.f32 %v193_v7, %v172_v8 }
  0x9b   :  { %v196_v10 = vmax.f32 %v194_v9, 0.0 }
  0x9d   :  { %v211_v11 = vsel %vm209_vm1, %v196_v10, 0 }
  0x9e   :  { %v237_v12 = vand.u32 4294901760, %v211_v11 }
  0xa0   :  { %v238_v13 = vsub.f32 %v211_v11, %v237_v12  ;;  %303 = vmatmul.f32.vlgmr.msrb.gmra.mxu3 %v237_v12 }
  0xa1   :  { %607 = vmatpush.msrb.mxu3 %v860_v18 }
  0xa2   :  { %341 = vmatmul.f32.vlgmr.msra.gmra.mxu0 %v238_v13  ;;  %v239_v14 = vand.u32 4294901760, %v238_v13 }
  0xa3   :  { %609 = vmatpush.msrb.mxu3 %v868_v21  ;;  %640 = vmatpush.msra.mxu0 %v509_v23 }
  0xa4   :  { %372 = vmatmul.f32.vlgmr.msra.gmra.mxu1 %v239_v14  ;;  %v240_v15 = vsub.f32 %v238_v13, %v239_v14 }
  0xa5   :  { %611 = vmatpush.msrb.mxu3 %v879_v25  ;;  %644 = vmatpush.msra.mxu0 %v515_v28 }
  0xa6   :  { %v241_v16 = vand.u32 4294901760, %v240_v15  ;;  %683 = vmatpush.msra.mxu1 %v860_v18 }
  0xa7   :  { %613 = vmatpush.msrb.mxu3 %v892_v30  ;;  %648 = vmatpush.msra.mxu0 %v521_v34 }
  0xa8   :  { %242 = vmatmul.f32.vlgmr.msrb.gmra.mxu2 %v241_v16  ;;  %446 = vmatmul.f32.vlgmr.msra.gmra.mxu3 %v237_v12 }
  0xa9   :  { %570 = vmatpush.msrb.mxu2 %v866_v20  ;;  %615 = vmatpush.msrb.mxu3 %v482_v36 }
  0xaa   :  { %652 = vmatpush.msra.mxu0 %v527_v40  ;;  %685 = vmatpush.msra.mxu1 %v868_v21  ;;  %v713_v21 = vld [vmem:[%s936_s6] ss:$0 sm:$0xff] }
  0xab   :  { %573 = vmatpush.msrb.mxu2 %v877_v24  ;;  %617 = vmatpush.msrb.mxu3 %v484_v41 }
  0xac   :  { %656 = vmatpush.msra.mxu0 %v533_v48  ;;  %687 = vmatpush.msra.mxu1 %v879_v25 }
  0xad   :  { %576 = vmatpush.msrb.mxu2 %v890_v29  ;;  %619 = vmatpush.msrb.mxu3 %v486_v47 }
  0xae   :  { %660 = vmatpush.msra.mxu0 %v539_v51  ;;  %689 = vmatpush.msra.mxu1 %v892_v30 }
  0xaf   :  { %579 = vmatpush.msrb.mxu2 %v526_v35  ;;  %621 = vmatpush.msrb.mxu3 %v488_v53 }
  0xb0   :  { %417 = vmatmul.f32.vlgmr.msra.gmra.mxu2 %v237_v12  ;;  %664 = vmatpush.msra.mxu0 %v545_v56 }
  0xb1   :  { %582 = vmatpush.msrb.mxu2 %v532_v42  ;;  %691 = vmatpush.msra.mxu1 %v482_v36 }
  0xb2   :  { %668 = vmatpush.msra.mxu0 %v551_v61 }
  0xb3   :  { %585 = vmatpush.msrb.mxu2 %v538_v46  ;;  %693 = vmatpush.msra.mxu1 %v484_v41 }
  0xb5   :  { %588 = vmatpush.msrb.mxu2 %v544_v52  ;;  %695 = vmatpush.msra.mxu1 %v486_v47 }
  0xb7   :  { %591 = vmatpush.msrb.mxu2 %v550_v57  ;;  %697 = vmatpush.msra.mxu1 %v488_v53 }
 0x11f   :  { %v342_v6 = vpop.f32.mrf.mxu0 }
 0x121   :  { %v373_v8 = vpop.f32.mrf.mxu1 }
 0x123   :  { %v304_v2 = vpop.f32.mrf.mxu3 }
 0x12b   :  { %v243_v3 = vpop.f32.mrf.mxu2  ;;  %v447_v12 = vpop.f32.mrf.mxu3 }
 0x12c   :  { %v244_v4 = vadd.f32 %v712_v1, %v243_v3 }
 0x12e   :  { %v305_v5 = vadd.f32 %v304_v2, %v244_v4 }
 0x130   :  { %v343_v7 = vadd.f32 %v342_v6, %v305_v5 }
 0x132   :  { %v374_v9 = vadd.f32 %v373_v8, %v343_v7 }
 0x133   :  { %v418_v10 = vpop.f32.mrf.mxu2 }
 0x134   :  { %v419_v11 = vadd.f32 %v418_v10, %v374_v9 }
 0x136   :  { %v448_v13 = vadd.f32 %v447_v12, %v419_v11 }
 0x138   :  { %v450_v14 = vmax.f32 %v448_v13, 0.0 }
 0x13a   :  { %v464_v15 = vsel %vm209_vm1, %v450_v14, 0 }
 0x13b   :  { %v490_v16 = vand.u32 4294901760, %v464_v15 }
 0x13d   :  { %v491_v17 = vsub.f32 %v464_v15, %v490_v16  ;;  %556 = vmatmul.f32.vlgmr.msrb.gmra.mxu1 %v490_v16 }
 0x13f   :  { %594 = vmatmul.f32.vlgmr.msrb.gmra.mxu2 %v491_v17  ;;  %v492_v18 = vand.u32 4294901760, %v491_v17 }
 0x141   :  { %625 = vmatmul.f32.vlgmr.msrb.gmra.mxu3 %v492_v18  ;;  %v493_v19 = vsub.f32 %v491_v17, %v492_v18 }
 0x143   :  { %v494_v20 = vand.u32 4294901760, %v493_v19 }
 0x145   :  { %495 = vmatmul.f32.vlgmr.msrb.gmra.mxu0 %v494_v20  ;;  %699 = vmatmul.f32.vlgmr.msra.gmra.mxu1 %v490_v16 }
 0x14d   :  { %670 = vmatmul.f32.vlgmr.msra.gmra.mxu0 %v490_v16 }
 0x1ba   :  { %v557_v22 = vpop.f32.mrf.mxu1 }
 0x1c2   :  { %v496_v23 = vpop.f32.mrf.mxu0  ;;  %v595_v26 = vpop.f32.mrf.mxu2 }
 0x1c3   :  { %v497_v24 = vadd.f32 %v713_v21, %v496_v23  ;;  %v700_v32 = vpop.f32.mrf.mxu1 }
 0x1c4   :  { %v626_v28 = vpop.f32.mrf.mxu3 }
 0x1c5   :  { %v558_v25 = vadd.f32 %v557_v22, %v497_v24 }
 0x1c7   :  { %v596_v27 = vadd.f32 %v595_v26, %v558_v25 }
 0x1c9   :  { %v627_v29 = vadd.f32 %v626_v28, %v596_v27 }
 0x1ca   :  { %v671_v30 = vpop.f32.mrf.mxu0 }
 0x1cb   :  { %v672_v31 = vadd.f32 %v671_v30, %v627_v29 }
 0x1cd   :  { %v701_v33 = vadd.f32 %v700_v32, %v672_v31 }
 0x1cf   :  { %704 = vst.msk [vmem:[%s937_s7] sm:$0x3] %vm703_vm2, %v701_v33 }
 0x1d0   :  { %709 = vsyncpa [#allocation3], 1 }

</bundles_post_ra>
